<compile_context>
chip_gen: v5e
topology: v5e:2x2
jax: 0.10.0
libtpu: 0.0.40
codegen_flags: <defaults>
</compile_context>

<pallas_src>
import numpy as np
import jax
import jax.numpy as jnp
from jax import lax
from jax.experimental import pallas as pl
from jax.experimental.pallas import tpu as pltpu


def _make_moe_gate_kernel(K: int, M: int, M_pad: int, B_real: int, tb: int):
    NEG = jnp.finfo(jnp.float32).min

    def kernel(feats_ref, wgate_ref, gates_ref, imp_ref, load_ref):
        i = pl.program_id(0)

        # logits = feats @ w_gate   (tb, M_pad), accumulate in f32 on the MXU.
        logits = jnp.dot(
            feats_ref[...], wgate_ref[...], preferred_element_type=jnp.float32
        )

        col_ids = lax.broadcasted_iota(jnp.int32, logits.shape, 1)
        # Padded expert columns (zero weights) must never be selected.
        if M_pad > M:
            logits = jnp.where(col_ids < M, logits, NEG)

        # --- top-K membership mask (iterative argmax; ties -> lowest index,
        # matching torch.topk ordering for distinct values).  K is a small
        # static constant so the Python loop unrolls. ---
        work = logits
        mask = jnp.zeros(logits.shape, dtype=jnp.bool_)
        for t in range(K):
            row_max = jnp.max(work, axis=1, keepdims=True)
            is_max = work == row_max
            first_idx = jnp.min(
                jnp.where(is_max, col_ids, M_pad), axis=1, keepdims=True
            )
            sel = col_ids == first_idx
            mask = jnp.logical_or(mask, sel)
            if t + 1 < K:
                work = jnp.where(sel, NEG, work)

        if K == 1:
            # softmax over a single selected logit is exactly 1.0.
            gates = mask.astype(jnp.float32)
        else:
            # softmax over the selected top-K logits, scattered back into
            # their original expert positions (non-selected positions are 0).
            # Exact division (NOT the approx EUP reciprocal) — the ~1e-3
            # relative error of the approx path exceeds the accuracy the
            # reference softmax provides.
            m = jnp.max(jnp.where(mask, logits, NEG), axis=1, keepdims=True)
            e = jnp.where(mask, jnp.exp(logits - m), 0.0)
            denom = jnp.sum(e, axis=1, keepdims=True)
            gates = e / denom

        # Lane-dense (tb, M_pad) store — M_pad is a multiple of 128.
        gates_ref[...] = gates.astype(gates_ref.dtype)

        # --- per-tile partial reductions: importance = gates.sum(0),
        # load = (gates > 0).sum(0).  Rows beyond the real batch (B padding)
        # are masked out so the load-balancing loss is unbiased.
        row_ids = lax.broadcasted_iota(jnp.int32, (tb, 1), 0) + i * tb
        valid = (row_ids < B_real).astype(jnp.float32)
        gv = gates * valid

        imp = jnp.sum(gv, axis=0, keepdims=True)                     # (1, M_pad)
        lod = jnp.sum((gv > 0).astype(jnp.float32), axis=0, keepdims=True)
        imp_ref[...] = imp.reshape(1, 1, M_pad)
        load_ref[...] = lod.reshape(1, 1, M_pad)

    return kernel


def _pick_tb(B: int, d: int, M_pad: int, in_itemsize: int, out_itemsize: int) -> int:
    """Largest batch tile that fits a conservative VMEM budget (safe on v5e/v6e/v7x)."""
    budget = 12 * 1024 * 1024                      # under the smallest scoped default (16 MiB on v5e)
    fixed = 2 * d * M_pad * in_itemsize            # double-buffered w_gate block
    per_row = 2 * (d * in_itemsize + M_pad * out_itemsize) + 8 * M_pad  # feats + gates (dbl-buf) + partials/scratch
    tb = (budget - fixed) // max(per_row, 1)
    tb = int(max(8, min(512, tb)))
    tb = (tb // 8) * 8                             # sublane multiple
    b8 = ((B + 7) // 8) * 8
    return max(8, min(tb, b8))


def moe_gate_forward(feats, w_gate, K=1, loss_coef=0.01, *, tb=None, matmul_dtype=None):
    """Pallas implementation of MoEGate.forward (noisy_gating=False path)."""
    B, d = feats.shape
    d2, M = w_gate.shape
    assert d == d2 and 1 <= K <= M

    out_dtype = feats.dtype

    # Optional reduced-precision MXU operands (bf16 on v6e/v7x). Default: keep
    # input dtype for exact numerical parity with the reference.
    if matmul_dtype is not None:
        feats_mm = feats.astype(matmul_dtype)
        w_gate_mm = w_gate.astype(matmul_dtype)
    else:
        feats_mm = feats
        w_gate_mm = w_gate

    in_itemsize = jnp.dtype(feats_mm.dtype).itemsize
    out_itemsize = jnp.dtype(out_dtype).itemsize

    # Lane-dense expert dimension.
    M_pad = int(max(128, pl.cdiv(M, 128) * 128))

    if tb is None:
        tb = _pick_tb(B, d, M_pad, in_itemsize, out_itemsize)
    assert tb % 8 == 0

    B_pad = int(pl.cdiv(B, tb) * tb)
    num_tiles = B_pad // tb

    # Pad batch rows (zeros, masked in-kernel) and expert columns (zeros,
    # forced to -inf in-kernel).
    if B_pad > B:
        feats_mm = jnp.pad(feats_mm, ((0, B_pad - B), (0, 0)))
    if M_pad > M:
        w_gate_mm = jnp.pad(w_gate_mm, ((0, 0), (0, M_pad - M)))

    kernel = _make_moe_gate_kernel(K, M, M_pad, B, tb)

    flops = 2 * B_pad * d * M_pad
    transcendentals = 0 if K == 1 else B_pad * M_pad
    bytes_accessed = (
        B_pad * d * in_itemsize            # feats
        + d * M_pad * in_itemsize          # w_gate
        + B_pad * M_pad * out_itemsize     # gates
        + 2 * num_tiles * M_pad * 4        # importance/load partials
    )

    gates_p, imp_p, load_p = pl.pallas_call(
        kernel,
        out_shape=(
            jax.ShapeDtypeStruct((B_pad, M_pad), out_dtype),           # gates (lane-dense)
            jax.ShapeDtypeStruct((num_tiles, 1, M_pad), jnp.float32),  # importance partials
            jax.ShapeDtypeStruct((num_tiles, 1, M_pad), jnp.float32),  # load partials
        ),
        grid_spec=pltpu.PrefetchScalarGridSpec(
            num_scalar_prefetch=0,
            grid=(num_tiles,),
            in_specs=[
                pl.BlockSpec((tb, d), lambda i: (i, 0)),       # feats tile
                pl.BlockSpec((d, M_pad), lambda i: (0, 0)),    # full (padded) w_gate
            ],
            out_specs=[
                pl.BlockSpec((tb, M_pad), lambda i: (i, 0)),       # gates tile
                pl.BlockSpec((1, 1, M_pad), lambda i: (i, 0, 0)),  # imp partial
                pl.BlockSpec((1, 1, M_pad), lambda i: (i, 0, 0)),  # load partial
            ],
        ),
        compiler_params=pltpu.CompilerParams(
            # No cross-iteration state -> batch axis is embarrassingly parallel
            # (sharded across both TensorCores on v7x; neutral on v5e/v6e).
            dimension_semantics=("parallel",),
        ),
        cost_estimate=pl.CostEstimate(
            flops=flops,
            transcendentals=transcendentals,
            bytes_accessed=bytes_accessed,
        ),
    )(feats_mm, w_gate_mm)

    gates = gates_p[:B, :M]
    importance = jnp.sum(imp_p.reshape(num_tiles, M_pad), axis=0)[:M]
    load = jnp.sum(load_p.reshape(num_tiles, M_pad), axis=0)[:M]

    # Scalar cv_squared loss over length-M vectors (glue; matches torch.var unbiased).
    def cv_squared(x):
        eps = 1e-10
        if x.shape[0] == 1:
            return jnp.zeros((), x.dtype)
        x = x.astype(jnp.float32)
        mean = jnp.mean(x)
        var = jnp.sum((x - mean) ** 2) / (x.shape[0] - 1)
        return var / (mean ** 2 + eps)

    loss = (cv_squared(importance) + cv_squared(load)) * loss_coef
    return gates, loss


def _reference_forward(feats, w_gate, K=1, loss_coef=0.01):
    """Pure-JAX reference mirroring the PyTorch module."""
    logits = feats @ w_gate
    M = w_gate.shape[1]
    top_logits, top_idx = lax.top_k(logits, min(K + 1, M))
    top_k_logits = top_logits[:, :K]
    top_k_idx = top_idx[:, :K]
    top_k_gates = jax.nn.softmax(top_k_logits, axis=1)
    gates = jnp.zeros_like(logits)
    gates = jax.vmap(lambda g, i, v: g.at[i].set(v))(gates, top_k_idx, top_k_gates)
    importance = gates.sum(0)
    load = (gates > 0).sum(0).astype(jnp.float32)

    def cv_squared(x):
        eps = 1e-10
        if x.shape[0] == 1:
            return jnp.zeros((), x.dtype)
        x = x.astype(jnp.float32)
        mean = jnp.mean(x)
        var = jnp.sum((x - mean) ** 2) / (x.shape[0] - 1)
        return var / (mean ** 2 + eps)

    loss = (cv_squared(importance) + cv_squared(load)) * loss_coef
    return gates, loss


if __name__ == "__main__":
    B, d, M, K = 16, 32, 4, 1

    key = jax.random.PRNGKey(0)
    kf, kw = jax.random.split(key)
    feats = jax.random.normal(kf, (B, d), dtype=jnp.float32)
    # Module __init__ uses zeros for w_gate (shape [d, M]); use a deterministic
    # non-zero init so the gating path is actually exercised.
    w_gate = 0.1 * jax.random.normal(kw, (d, M), dtype=jnp.float32)

    gates, loss = moe_gate_forward(feats, w_gate, K=K, loss_coef=0.01)
    jax.block_until_ready((gates, loss))

    gates_ref, loss_ref = _reference_forward(feats, w_gate, K=K, loss_coef=0.01)
    np.testing.assert_allclose(np.asarray(gates), np.asarray(gates_ref),
                               rtol=1e-5, atol=1e-5)
    np.testing.assert_allclose(np.asarray(loss), np.asarray(loss_ref),
                               rtol=1e-5, atol=1e-6)

    # Also exercise a non-tile-aligned batch and K>1 path once (correctness only).
    B2, K2 = 13, 2
    feats2 = jax.random.normal(kf, (B2, d), dtype=jnp.float32)
    g2, l2 = moe_gate_forward(feats2, w_gate, K=K2, loss_coef=0.01)
    jax.block_until_ready((g2, l2))
    g2r, l2r = _reference_forward(feats2, w_gate, K=K2, loss_coef=0.01)
    np.testing.assert_allclose(np.asarray(g2), np.asarray(g2r), rtol=1e-4, atol=1e-5)
    np.testing.assert_allclose(np.asarray(l2), np.asarray(l2r), rtol=1e-4, atol=1e-5)

    print("KERNEL_OK")
</pallas_src>

<mosaic_0001>
module attributes {stable_mosaic.version = 11 : i64} {
  func.func @kernel(%arg0: i32, %arg1: memref<16x32xf32, #tpu.memory_space<vmem>>, %arg2: memref<32x128xf32, #tpu.memory_space<vmem>>, %arg3: memref<16x128xf32, #tpu.memory_space<vmem>>, %arg4: memref<1x1x128xf32, #tpu.memory_space<vmem>>, %arg5: memref<1x1x128xf32, #tpu.memory_space<vmem>>) attributes {dimension_semantics = [#tpu.dimension_semantics<parallel>], iteration_bounds = array<i64: 1>, scalar_prefetch = 0 : i64, scratch_operands = 0 : i64, tpu.core_type = #tpu.core_type<tc>, window_params = [{transform_indices = @transform_0, window_bounds = array<i64: 16, 32>}, {pipeline_mode = #tpu.pipeline_mode<synchronous>, transform_indices = @transform_1, window_bounds = array<i64: 32, 128>}, {transform_indices = @transform_2, window_bounds = array<i64: 16, 128>}, {transform_indices = @transform_3, window_bounds = array<i64: 1, 1, 128>}, {transform_indices = @transform_4, window_bounds = array<i64: 1, 1, 128>}]} {
    %c0 = arith.constant 0 : index
    %c0_0 = arith.constant 0 : index
    %0 = vector.load %arg1[%c0, %c0_0] : memref<16x32xf32, #tpu.memory_space<vmem>>, vector<16x32xf32>
    %c0_1 = arith.constant 0 : index
    %c0_2 = arith.constant 0 : index
    %1 = vector.load %arg2[%c0_1, %c0_2] : memref<32x128xf32, #tpu.memory_space<vmem>>, vector<32x128xf32>
    %cst = arith.constant dense<0.000000e+00> : vector<16x128xf32>
    %2 = tpu.matmul %0, %1, %cst {dimension_numbers = #tpu.dot_dimension_numbers<[1], [0], [0], [1], [0, 0, 1, 1], [], []>} : vector<16x32xf32>, vector<32x128xf32>, vector<16x128xf32> -> vector<16x128xf32>
    %3 = tpu.iota {dimensions = array<i32: 1>} : vector<16x128xi32>
    %c4_i32 = arith.constant 4 : i32
    %4 = vector.broadcast %c4_i32 : i32 to vector<16x128xi32>
    %5 = arith.cmpi slt, %3, %4 : vector<16x128xi32>
    %cst_3 = arith.constant -3.40282347E+38 : f32
    %6 = vector.broadcast %cst_3 : f32 to vector<16x128xf32>
    %7 = arith.select %5, %2, %6 : vector<16x128xi1>, vector<16x128xf32>
    %false = arith.constant false
    %8 = vector.broadcast %false : i1 to vector<16x128xi1>
    %cst_4 = arith.constant dense<0xFF800000> : vector<16xf32>
    %9 = vector.multi_reduction <maximumf>, %7, %cst_4 [1] : vector<16x128xf32> to vector<16xf32>
    %10 = vector.shape_cast %9 : vector<16xf32> to vector<16x1xf32>
    %11 = vector.broadcast %10 : vector<16x1xf32> to vector<16x128xf32>
    %12 = arith.cmpf oeq, %7, %11 : vector<16x128xf32>
    %c128_i32 = arith.constant 128 : i32
    %13 = vector.broadcast %c128_i32 : i32 to vector<16x128xi32>
    %14 = arith.select %12, %3, %13 : vector<16x128xi1>, vector<16x128xi32>
    %cst_5 = arith.constant dense<2147483647> : vector<16xi32>
    %15 = vector.multi_reduction <minsi>, %14, %cst_5 [1] : vector<16x128xi32> to vector<16xi32>
    %16 = vector.shape_cast %15 : vector<16xi32> to vector<16x1xi32>
    %17 = vector.broadcast %16 : vector<16x1xi32> to vector<16x128xi32>
    %18 = arith.cmpi eq, %3, %17 : vector<16x128xi32>
    %19 = arith.ori %8, %18 : vector<16x128xi1>
    %20 = arith.extui %19 : vector<16x128xi1> to vector<16x128xi32>
    %21 = arith.sitofp %20 : vector<16x128xi32> to vector<16x128xf32>
    %c0_6 = arith.constant 0 : index
    %c0_7 = arith.constant 0 : index
    %22 = vector.load %arg3[%c0_6, %c0_7] : memref<16x128xf32, #tpu.memory_space<vmem>>, vector<16x128xf32>
    tpu.vector_store %arg3[%c0_6, %c0_7], %21 {strides = array<i32>} : memref<16x128xf32, #tpu.memory_space<vmem>>, vector<16x128xf32>,
    %23 = tpu.iota {dimensions = array<i32: 0>} : vector<16x1xi32>
    %c16_i32 = arith.constant 16 : i32
    %24 = arith.muli %arg0, %c16_i32 : i32
    %25 = vector.broadcast %24 : i32 to vector<16x1xi32>
    %26 = arith.addi %23, %25 : vector<16x1xi32>
    %c16_i32_8 = arith.constant 16 : i32
    %27 = vector.broadcast %c16_i32_8 : i32 to vector<16x1xi32>
    %28 = arith.cmpi slt, %26, %27 : vector<16x1xi32>
    %29 = arith.extui %28 : vector<16x1xi1> to vector<16x1xi32>
    %30 = arith.sitofp %29 : vector<16x1xi32> to vector<16x1xf32>
    %31 = vector.broadcast %30 : vector<16x1xf32> to vector<16x128xf32>
    %32 = arith.mulf %21, %31 : vector<16x128xf32>
    %cst_9 = arith.constant dense<0.000000e+00> : vector<128xf32>
    %33 = vector.multi_reduction <add>, %32, %cst_9 [0] : vector<16x128xf32> to vector<128xf32>
    %34 = vector.shape_cast %33 : vector<128xf32> to vector<1x128xf32>
    %cst_10 = arith.constant 0.000000e+00 : f32
    %35 = vector.broadcast %cst_10 : f32 to vector<16x128xf32>
    %36 = arith.cmpf ogt, %32, %35 : vector<16x128xf32>
    %37 = arith.extui %36 : vector<16x128xi1> to vector<16x128xi32>
    %38 = arith.sitofp %37 : vector<16x128xi32> to vector<16x128xf32>
    %cst_11 = arith.constant dense<0.000000e+00> : vector<128xf32>
    %39 = vector.multi_reduction <add>, %38, %cst_11 [0] : vector<16x128xf32> to vector<128xf32>
    %40 = vector.shape_cast %39 : vector<128xf32> to vector<1x128xf32>
    %41 = vector.shape_cast %34 : vector<1x128xf32> to vector<1x1x128xf32>
    %c0_12 = arith.constant 0 : index
    %c0_13 = arith.constant 0 : index
    %c0_14 = arith.constant 0 : index
    %42 = vector.load %arg4[%c0_12, %c0_13, %c0_14] : memref<1x1x128xf32, #tpu.memory_space<vmem>>, vector<1x1x128xf32>
    tpu.vector_store %arg4[%c0_12, %c0_13, %c0_14], %41 {strides = array<i32>} : memref<1x1x128xf32, #tpu.memory_space<vmem>>, vector<1x1x128xf32>,
    %43 = vector.shape_cast %40 : vector<1x128xf32> to vector<1x1x128xf32>
    %c0_15 = arith.constant 0 : index
    %c0_16 = arith.constant 0 : index
    %c0_17 = arith.constant 0 : index
    %44 = vector.load %arg5[%c0_15, %c0_16, %c0_17] : memref<1x1x128xf32, #tpu.memory_space<vmem>>, vector<1x1x128xf32>
    tpu.vector_store %arg5[%c0_15, %c0_16, %c0_17], %43 {strides = array<i32>} : memref<1x1x128xf32, #tpu.memory_space<vmem>>, vector<1x1x128xf32>,
    return
  }
  func.func @transform_0(%arg0: i32) -> (i32, i32) {
    %c0_i32 = arith.constant 0 : i32
    %c0_i32_0 = arith.constant 0 : i32
    return %arg0, %c0_i32 : i32, i32
  }
  func.func @transform_1(%arg0: i32) -> (i32, i32) {
    %c0_i32 = arith.constant 0 : i32
    %c0_i32_0 = arith.constant 0 : i32
    %c0_i32_1 = arith.constant 0 : i32
    return %c0_i32, %c0_i32_0 : i32, i32
  }
  func.func @transform_2(%arg0: i32) -> (i32, i32) {
    %c0_i32 = arith.constant 0 : i32
    %c0_i32_0 = arith.constant 0 : i32
    return %arg0, %c0_i32 : i32, i32
  }
  func.func @transform_3(%arg0: i32) -> (i32, i32, i32) {
    %c0_i32 = arith.constant 0 : i32
    %c0_i32_0 = arith.constant 0 : i32
    %c0_i32_1 = arith.constant 0 : i32
    return %arg0, %c0_i32, %c0_i32_0 : i32, i32, i32
  }
  func.func @transform_4(%arg0: i32) -> (i32, i32, i32) {
    %c0_i32 = arith.constant 0 : i32
    %c0_i32_0 = arith.constant 0 : i32
    %c0_i32_1 = arith.constant 0 : i32
    return %arg0, %c0_i32, %c0_i32_0 : i32, i32, i32
  }
}

</mosaic_0001>

<bundles_post_ra>
// kernel: tpu_custom_call.1
= control target key start
LH: loop header
LB: loop body
LE: loop exit
PB: predicated region body
PF: predicated region fallthrough
CT: control target
= control target key end

     0   :  { %10 = vsyncpa [#allocation3], 0  ;;  %s424_s0 = inlined_call_operand.hbm [shape: f32[16,32], index: 0, kind: input, shape index: {}]   ;;  %s425_s1 = inlined_call_operand.hbm [shape: f32[32,128], index: 1, kind: input, shape index: {}]   ;;  %s426_s2 = inlined_call_operand.hbm [shape: f32[16,128], index: 2, kind: output, shape index: {0}]   ;;  %s427_s3 = inlined_call_operand.hbm [shape: f32[1,1,128], index: 3, kind: output, shape index: {1}]   ;;  %s428_s4 = inlined_call_operand.hbm [shape: f32[1,1,128], index: 4, kind: output, shape index: {2}]  }
   0x1   :  { %11 = vsyncpa [#allocation6], 0 }
   0x2   :  { %12 = vsyncpa [#allocation4], 0 }
   0x3   :  { %13 = vsyncpa [#allocation9], 0  ;;  %s18_s17 = sshll.u32 %s424_s0, 4  ;;  %s367_s18 = smov [#allocation2]   ;;  %s19_s17 = int_to_ptr.hbm [resolvable:$true] %s18_s17 }
   0x4   :  { %s20_s19 = sshll.u32 %s367_s18, 4  ;;  %s31_s22 = sshll.u32 %s425_s1, 4  ;;  %s21_s19 = int_to_ptr.vmem [resolvable:$true] %s20_s19  ;;  %s32_s22 = int_to_ptr.hbm [resolvable:$true] %s31_s22 }
   0x5   :  { %s368_s23 = smov 128   ;;  %s369_s24 = smov 8  }
   0x6   :  { %26 = dma.hbm_to_vmem [thread:$0]  %s19_s17, 256, %s21_s19, [#allocation3], %s368_s23, %s368_s23, %s369_s24  }
   0x7   :  { %s370_s25 = smov [#allocation5]  }
   0x8   :  { %s33_s26 = sshll.u32 %s370_s25, 4  ;;  %s34_s26 = int_to_ptr.vmem [resolvable:$true] %s33_s26 }
   0x9   :  { %39 = dma.hbm_to_vmem [thread:$0]  %s32_s22, 512, %s34_s26, [#allocation6], %s368_s23, %s368_s23, %s369_s24  }
   0xa   :  { %359 = dma.done.wait [#allocation3], 256  }
   0xb   :  { %360 = vsyncadd [#allocation3], 4294967040 }
   0xc   :  { %361 = dma.done.wait [#allocation6], 512  }
   0xd   :  { %362 = vsyncadd [#allocation6], 4294966784  ;;  %v53_v0 = vld [vmem:[#allocation5 + $0x18] sm:$0xff]  ;;  %v52_v1 = vld [vmem:[#allocation5 + $0x10] sm:$0xff]  ;;  %vm54_vm0 = vcmask 261120   ;;  %v84_v6 = vlaneseq  ;;  %v371_v34 = vmov 0.0  }
   0xe   :  { %73 = vmatpush.msra.mxu0 %v53_v0  ;;  %227 = vmatpush.msra.mxu1 %v53_v0  ;;  %v51_v2 = vld [vmem:[#allocation5 + $0x8] sm:$0xff]  ;;  %v50_v3 = vld [vmem:[#allocation5] sm:$0xff]  ;;  %v48_v4 = vld [vmem:[#allocation2] sm:$0xff]  ;;  %s372_s0 = smov [#allocation7]   ;;  %s176_s29 = sshll.u32 %s426_s2, 4  ;;  %s177_s29 = int_to_ptr.hbm [resolvable:$true] %s176_s29 }
   0xf   :  { %v49_v5 = vld [vmem:[#allocation2 + $0x8] sm:$0xff]  ;;  %v85_v7 = vand.u32 127, %v84_v6  ;;  %s174_s1 = sshll.u32 %s372_s0, 4  ;;  %s373_s2 = smov [#allocation8]   ;;  %s175_s1 = int_to_ptr.vmem [resolvable:$true] %s174_s1 }
  0x10   :  { %74 = vmatpush.msra.mxu0 %v52_v1  ;;  %228 = vmatpush.msra.mxu1 %v52_v1  ;;  %s188_s30 = sshll.u32 %s373_s2, 4  ;;  %s190_s7 = sshll.u32 %s427_s3, 4  ;;  %s189_s30 = int_to_ptr.vmem [resolvable:$true] %s188_s30  ;;  %s191_s7 = int_to_ptr.hbm [resolvable:$true] %s190_s7 }
  0x11   :  { %vm86_vm1 = vcmp.lt.s32.totalorder %v85_v7, 4  ;;  %s374_s8 = smov [#allocation10]   ;;  %s201_s12 = sshll.u32 %s428_s4, 4  ;;  %s202_s12 = int_to_ptr.hbm [resolvable:$true] %s201_s12 }
  0x12   :  { %75 = vmatpush.msra.mxu0 %v51_v2  ;;  %229 = vmatpush.msra.mxu1 %v51_v2  ;;  %s199_s9 = sshll.u32 %s374_s8, 4  ;;  %s200_s9 = int_to_ptr.vmem [resolvable:$true] %s199_s9 }
  0x14   :  { %76 = vmatpush.msra.mxu0 %v50_v3  ;;  %230 = vmatpush.msra.mxu1 %v50_v3 }
  0x15   :  { %221 = vmatmul.msk.f32.vlgmr.msra.gmra.mxu0 %vm54_vm0, %v48_v4  ;;  %222 = vmatmul.msk.f32.vlgmr.msra.gmra.mxu1 %vm54_vm0, %v49_v5 }
  0x92   :  { %v78_v8 = vpop.f32.mrf.mxu0  ;;  %v81_v10 = vpop.f32.mrf.mxu1 }
  0x93   :  { %v87_v9 = vsel %vm86_vm1, %v78_v8, -3.4028235e+38  ;;  %v88_v11 = vsel %vm86_vm1, %v81_v10, -3.4028235e+38 }
  0x94   :  { %89 = vmax.xlane.f32.xlu0 %v87_v9 }
  0x9c   :  { %91 = vmax.xlane.f32.xlu0 %v88_v11 }
 0x107   :  { %v90_v12 = vpop.xlane.xlu0 %89 }
 0x108   :  { %vm93_vm2 = vcmp.eq.f32.partialorder %v87_v9, %v90_v12 }
 0x109   :  { %v95_v13 = vsel %vm93_vm2, %v85_v7, 128 }
 0x10a   :  { %v98_v14 = vshra.s32 %v95_v13, 16  ;;  %v97_v20 = vand.u32 65535, %v95_v13 }
 0x10c   :  { %v100_v15 = vcvt.s32.f32 %v98_v14  ;;  %v99_v22 = vcvt.s32.f32 %v97_v20 }
 0x10e   :  { %101 = vmin.xlane.f32.xlu1 %v100_v15 }
 0x10f   :  { %v92_v16 = vpop.xlane.xlu0 %91 }
 0x110   :  { %vm94_vm3 = vcmp.eq.f32.partialorder %v88_v11, %v92_v16 }
 0x111   :  { %v96_v17 = vsel %vm94_vm3, %v85_v7, 128 }
 0x112   :  { %v112_v18 = vshra.s32 %v96_v17, 16  ;;  %v111_v24 = vand.u32 65535, %v96_v17 }
 0x114   :  { %v114_v19 = vcvt.s32.f32 %v112_v18  ;;  %v113_v26 = vcvt.s32.f32 %v111_v24 }
 0x116   :  { %115 = vmin.xlane.f32.xlu1 %v114_v19 }
 0x181   :  { %v102_v21 = vpop.xlane.xlu1 %101 }
 0x182   :  { %vm103_vm4 = vcmp.eq.f32.partialorder %v100_v15, %v102_v21  ;;  %v108_v28 = vcvt.f32.s32 %v102_v21 }
 0x183   :  { %v104_v23 = vsel %vm103_vm4, %v99_v22, inf }
 0x184   :  { %105 = vmin.xlane.f32.xlu2 %v104_v23  ;;  %v109_v30 = vshll.u32 %v108_v28, 16 }
 0x189   :  { %v116_v25 = vpop.xlane.xlu1 %115 }
 0x18a   :  { %vm117_vm5 = vcmp.eq.f32.partialorder %v114_v19, %v116_v25  ;;  %v122_v33 = vcvt.f32.s32 %v116_v25 }
 0x18b   :  { %v118_v27 = vsel %vm117_vm5, %v113_v26, inf }
 0x18c   :  { %119 = vmin.xlane.f32.xlu2 %v118_v27  ;;  %v123_v37 = vshll.u32 %v122_v33, 16 }
 0x1f7   :  { %v106_v29 = vpop.xlane.xlu2 %105 }
 0x1f8   :  { %v107_v31 = vcvt.f32.s32 %v106_v29 }
 0x1fa   :  { %v110_v32 = vadd.s32 %v109_v30, %v107_v31 }
 0x1fc   :  { %vm125_vm6 = vcmp.eq.s32.totalorder %v85_v7, %v110_v32 }
 0x1fd   :  { %v223_v35 = vsel %vm125_vm6, 1.0, %v371_v34 }
 0x1fe   :  { %131 = vst [vmem:[#allocation7] sm:$0xff] %v223_v35  ;;  %vm155_vm7 = vcmp.gt.f32.partialorder %v223_v35, 0.0 }
 0x1ff   :  { %v120_v36 = vpop.xlane.xlu2 %119  ;;  %v225_v42 = vsel %vm155_vm7, 1.0, %v371_v34 }
 0x200   :  { %v121_v38 = vcvt.f32.s32 %v120_v36 }
 0x202   :  { %v124_v39 = vadd.s32 %v123_v37, %v121_v38 }
 0x204   :  { %vm126_vm8 = vcmp.eq.s32.totalorder %v85_v7, %v124_v39 }
 0x205   :  { %v224_v40 = vsel %vm126_vm8, 1.0, %v371_v34 }
 0x206   :  { %v148_v41 = vadd.f32 %v224_v40, %v223_v35  ;;  %vm156_vm9 = vcmp.gt.f32.partialorder %v224_v40, 0.0  ;;  %132 = vst [vmem:[#allocation7 + $0x8] sm:$0xff] %v224_v40 }
 0x207   :  { %v226_v43 = vsel %vm156_vm9, 1.0, %v371_v34  ;;  %182 = dma.vmem_to_hbm [thread:$0]  %s175_s1, 256, %s177_s29, [#allocation4], %s368_s23, %s368_s23, %s369_s24  }
 0x208   :  { %v149_v44 = vrot.slane %v148_v41, 4  ;;  %v161_v45 = vadd.f32 %v226_v43, %v225_v42 }
 0x20a   :  { %v150_v46 = vadd.f32 %v149_v44, %v148_v41  ;;  %v162_v47 = vrot.slane %v161_v45, 4 }
 0x20c   :  { %v163_v48 = vadd.f32 %v162_v47, %v161_v45  ;;  %v151_v49 = vrot.slane %v150_v46, 2 }
 0x20e   :  { %v152_v50 = vadd.f32 %v151_v49, %v150_v46  ;;  %v164_v51 = vrot.slane %v163_v48, 2 }
 0x210   :  { %v153_v52 = vrot.slane %v152_v50, 1  ;;  %v165_v53 = vadd.f32 %v164_v51, %v163_v48 }
 0x212   :  { %v154_v54 = vadd.f32 %v153_v52, %v152_v50  ;;  %v166_v55 = vrot.slane %v165_v53, 1 }
 0x214   :  { %168 = vst [vmem:[#allocation8] sm:$0x1] %v154_v54  ;;  %v167_v56 = vadd.f32 %v166_v55, %v165_v53 }
 0x215   :  { %193 = dma.vmem_to_hbm [thread:$0]  %s189_s30, 16, %s191_s7, [#allocation9]  }
 0x216   :  { %169 = vst [vmem:[#allocation10] sm:$0x1] %v167_v56 }
 0x217   :  { %204 = dma.vmem_to_hbm [thread:$0]  %s200_s9, 16, %s202_s12, [#allocation9]  }
 0x218   :  { %363 = dma.done.wait [#allocation4], 256  }
 0x219   :  { %364 = vsyncadd [#allocation4], 4294967040 }
 0x21a   :  { %365 = dma.done.wait [#allocation9], 32  }
 0x21b   :  { %366 = vsyncadd [#allocation9], 4294967264 }
 0x21c   :  { %217 = vsyncpa [#allocation3], 1 }
 0x21d   :  { %218 = vsyncpa [#allocation6], 1 }
 0x21e   :  { %219 = vsyncpa [#allocation4], 1 }
 0x21f   :  { %220 = vsyncpa [#allocation9], 1 }

</bundles_post_ra>
